<compile_context>
chip_gen: v5e
topology: v5e:2x2
jax: 0.10.0
libtpu: 0.0.40
codegen_flags: <defaults>
</compile_context>

<pallas_src>
import math

import jax
import jax.numpy as jnp
from jax.experimental import pallas as pl
from jax.experimental.pallas import tpu as pltpu

# ----------------------- config (small, BERT-like) -----------------------
BATCH = 2
SEQ = 8
HIDDEN = 32
NUM_HEADS = 4
HEAD_DIM = HIDDEN // NUM_HEADS
INTERMEDIATE = 64
NUM_LAYERS = 2
LN_EPS = 1e-12


# ----------------------- in-kernel helpers -----------------------
def _gelu(x):
    # TODO(synk): reference uses exact erf-GELU; erf has no guaranteed Mosaic
    # lowering, so the tanh approximation (EUP tanh, max abs dev ~3e-4) is used.
    c = math.sqrt(2.0 / math.pi)
    return 0.5 * x * (1.0 + jnp.tanh(c * (x + 0.044715 * x * x * x)))


def _layernorm(x, gamma, beta):
    # TF-style layernorm (BERTLayerNorm): eps inside the sqrt; rsqrt -> EUP.
    u = jnp.mean(x, axis=-1, keepdims=True)
    d = x - u
    s = jnp.mean(d * d, axis=-1, keepdims=True)
    return gamma * (d * jax.lax.rsqrt(s + LN_EPS)) + beta


# ----------------------- fused encoder kernel -----------------------
def bert_encoder_kernel(x_ref, mask_ref,
                        wqkv_ref, bqkv_ref, wao_ref, bao_ref, g1_ref, be1_ref,
                        wi_ref, bi_ref, wo_ref, bo_ref, g2_ref, be2_ref,
                        out_ref, h_ref):
    """grid = (batch, layer). h_ref carries the hidden state across layers."""
    layer = pl.program_id(1)

    @pl.when(layer == 0)
    def _seed():
        h_ref[...] = x_ref[0]            # (S, H) from the encoder input

    x = h_ref[...]                       # (S, H) current hidden state
    mask = mask_ref[0]                   # (1, S) additive mask over keys

    # ---- fused QKV projection, batched over heads ----
    # wqkv: (NH, H, 3*HD), q-slice pre-scaled by 1/sqrt(HD) at pack time.
    xb = jnp.broadcast_to(x, (NUM_HEADS,) + x.shape)          # (NH, S, H)
    qkv = jax.lax.dot_general(
        xb, wqkv_ref[...], (((2,), (1,)), ((0,), (0,))),
        preferred_element_type=jnp.float32) + bqkv_ref[...]   # (NH, S, 3*HD)
    q = qkv[..., :HEAD_DIM]
    k = qkv[..., HEAD_DIM:2 * HEAD_DIM]
    v = qkv[..., 2 * HEAD_DIM:]

    # ---- scores + softmax (all heads at once) ----
    scores = jax.lax.dot_general(
        q, k, (((2,), (2,)), ((0,), (0,))),
        preferred_element_type=jnp.float32)                   # (NH, S, S)
    scores = scores + mask                                    # broadcast over heads/queries
    scores = scores - jnp.max(scores, axis=-1, keepdims=True)
    probs = jnp.exp(scores)
    probs = probs * pl.reciprocal(
        jnp.sum(probs, axis=-1, keepdims=True), approx=True)

    ctx = jax.lax.dot_general(
        probs, v, (((2,), (1,)), ((0,), (0,))),
        preferred_element_type=jnp.float32)                   # (NH, S, HD)

    # ---- BERTSelfOutput dense: sum_h ctx_h @ Wao_h  ==  concat(heads) @ Wao ----
    attn = jax.lax.dot_general(
        ctx, wao_ref[...], (((2,), (1,)), ((0,), (0,))),
        preferred_element_type=jnp.float32)                   # (NH, S, H)
    attn = jnp.sum(attn, axis=0) + bao_ref[...]               # (S, H)
    attn = _layernorm(attn + x, g1_ref[...], be1_ref[...])

    # ---- BERTIntermediate: dense + gelu ----
    inter = jnp.dot(attn, wi_ref[...],
                    preferred_element_type=jnp.float32) + bi_ref[...]
    inter = _gelu(inter)

    # ---- BERTOutput: dense + residual + layernorm ----
    out = jnp.dot(inter, wo_ref[...],
                  preferred_element_type=jnp.float32) + bo_ref[...]
    out = _layernorm(out + attn, g2_ref[...], be2_ref[...])

    h_ref[...] = out                     # carry to next layer
    out_ref[0, 0] = out.astype(out_ref.dtype)


# ----------------------- wrapper -----------------------
def make_encoder_call(num_layers, B, S, H, packed_params):
    in_specs = [
        pl.BlockSpec((1, S, H), lambda b, l: (b, 0, 0)),   # hidden_states
        pl.BlockSpec((1, 1, S), lambda b, l: (b, 0, 0)),   # additive mask
    ]
    for w in packed_params:                                # weights: resident in VMEM
        zeros = (0,) * w.ndim
        in_specs.append(pl.BlockSpec(w.shape, lambda b, l, z=zeros: z))

    return pl.pallas_call(
        bert_encoder_kernel,
        out_shape=jax.ShapeDtypeStruct((num_layers, B, S, H), jnp.float32),
        grid=(B, num_layers),
        in_specs=in_specs,
        out_specs=pl.BlockSpec((1, 1, S, H), lambda b, l: (l, b, 0, 0)),
        scratch_shapes=[pltpu.VMEM((S, H), jnp.float32)],
        compiler_params=pltpu.CompilerParams(
            dimension_semantics=("parallel", "arbitrary")),
    )


def init_params(key, H, I):
    ks = jax.random.split(key, 6)
    std = 0.02
    return dict(
        wq=std * jax.random.normal(ks[0], (H, H), jnp.float32), bq=jnp.zeros((H,), jnp.float32),
        wk=std * jax.random.normal(ks[1], (H, H), jnp.float32), bk=jnp.zeros((H,), jnp.float32),
        wv=std * jax.random.normal(ks[2], (H, H), jnp.float32), bv=jnp.zeros((H,), jnp.float32),
        wao=std * jax.random.normal(ks[3], (H, H), jnp.float32), bao=jnp.zeros((H,), jnp.float32),
        g1=jnp.ones((H,), jnp.float32), be1=jnp.zeros((H,), jnp.float32),
        wi=std * jax.random.normal(ks[4], (H, I), jnp.float32), bi=jnp.zeros((I,), jnp.float32),
        wo=std * jax.random.normal(ks[5], (I, H), jnp.float32), bo=jnp.zeros((H,), jnp.float32),
        g2=jnp.ones((H,), jnp.float32), be2=jnp.zeros((H,), jnp.float32),
    )
    # TODO(synk): dgedt_1/dgedt_2/sigmoid/cos in BERTLayer.__init__ and the
    # dead `layer_i >= 10000` branch are never used in forward; no params here.


def pack_params(p, num_heads, head_dim):
    """Pack per-head QKV (scale folded into Q) and the attn-output dense."""
    H = p["wq"].shape[0]
    scale = 1.0 / math.sqrt(head_dim)

    def w_heads(w):        # (H, H) -> (NH, H, HD)
        return jnp.transpose(w.reshape(H, num_heads, head_dim), (1, 0, 2))

    def b_heads(b):        # (H,) -> (NH, 1, HD)
        return b.reshape(num_heads, 1, head_dim)

    wqkv = jnp.concatenate(
        [w_heads(p["wq"]) * scale, w_heads(p["wk"]), w_heads(p["wv"])], axis=-1)
    bqkv = jnp.concatenate(
        [b_heads(p["bq"]) * scale, b_heads(p["bk"]), b_heads(p["bv"])], axis=-1)
    wao3 = p["wao"].reshape(num_heads, head_dim, H)            # (NH, HD, H)
    row = lambda b: b.reshape(1, -1)
    return [
        wqkv, bqkv, wao3, row(p["bao"]), row(p["g1"]), row(p["be1"]),
        p["wi"], row(p["bi"]), p["wo"], row(p["bo"]), row(p["g2"]), row(p["be2"]),
    ]


def bert_encoder_forward(hidden_states, attention_mask, packed_params, num_layers):
    """Mirrors BERTEncoder.forward: returns list of per-layer hidden states."""
    B, S, H = hidden_states.shape
    mask = attention_mask.reshape(B, 1, S).astype(jnp.float32)
    call = make_encoder_call(num_layers, B, S, H, packed_params)
    all_h = call(hidden_states, mask, *packed_params)          # (L, B, S, H)
    return [all_h[l] for l in range(num_layers)]


if __name__ == "__main__":
    key = jax.random.PRNGKey(0)
    k_x, k_p = jax.random.split(key)

    hidden_states = jax.random.normal(k_x, (BATCH, SEQ, HIDDEN), jnp.float32)
    # additive attention mask [B, 1, 1, S]: last two key positions of batch 1 masked
    mask = jnp.zeros((BATCH, 1, 1, SEQ), jnp.float32)
    mask = mask.at[1, 0, 0, -2:].set(-10000.0)

    params = init_params(k_p, HIDDEN, INTERMEDIATE)
    packed = pack_params(params, NUM_HEADS, HEAD_DIM)

    outs = bert_encoder_forward(hidden_states, mask, packed, NUM_LAYERS)
    for o in outs:
        jax.block_until_ready(o)

    assert len(outs) == NUM_LAYERS
    assert outs[-1].shape == (BATCH, SEQ, HIDDEN)
    assert bool(jnp.all(jnp.isfinite(outs[-1])))
    print("KERNEL_OK")
</pallas_src>

<mosaic_0001>
module attributes {stable_mosaic.version = 11 : i64} {
  func.func @bert_encoder_kernel(%arg0: i32, %arg1: i32, %arg2: memref<1x8x32xf32, #tpu.memory_space<vmem>>, %arg3: memref<1x1x8xf32, #tpu.memory_space<vmem>>, %arg4: memref<4x32x24xf32, #tpu.memory_space<vmem>>, %arg5: memref<4x1x24xf32, #tpu.memory_space<vmem>>, %arg6: memref<4x8x32xf32, #tpu.memory_space<vmem>>, %arg7: memref<1x32xf32, #tpu.memory_space<vmem>>, %arg8: memref<1x32xf32, #tpu.memory_space<vmem>>, %arg9: memref<1x32xf32, #tpu.memory_space<vmem>>, %arg10: memref<32x64xf32, #tpu.memory_space<vmem>>, %arg11: memref<1x64xf32, #tpu.memory_space<vmem>>, %arg12: memref<64x32xf32, #tpu.memory_space<vmem>>, %arg13: memref<1x32xf32, #tpu.memory_space<vmem>>, %arg14: memref<1x32xf32, #tpu.memory_space<vmem>>, %arg15: memref<1x32xf32, #tpu.memory_space<vmem>>, %arg16: memref<1x1x8x32xf32, #tpu.memory_space<vmem>>, %arg17: memref<8x32xf32, #tpu.memory_space<vmem>>) attributes {dimension_semantics = [#tpu.dimension_semantics<parallel>, #tpu.dimension_semantics<arbitrary>], iteration_bounds = array<i64: 2, 2>, scalar_prefetch = 0 : i64, scratch_operands = 1 : i64, tpu.core_type = #tpu.core_type<tc>, window_params = [{transform_indices = @transform_0, window_bounds = array<i64: 1, 8, 32>}, {transform_indices = @transform_1, window_bounds = array<i64: 1, 1, 8>}, {pipeline_mode = #tpu.pipeline_mode<synchronous>, transform_indices = @transform_2, window_bounds = array<i64: 4, 32, 24>}, {pipeline_mode = #tpu.pipeline_mode<synchronous>, transform_indices = @transform_3, window_bounds = array<i64: 4, 1, 24>}, {pipeline_mode = #tpu.pipeline_mode<synchronous>, transform_indices = @transform_4, window_bounds = array<i64: 4, 8, 32>}, {pipeline_mode = #tpu.pipeline_mode<synchronous>, transform_indices = @transform_5, window_bounds = array<i64: 1, 32>}, {pipeline_mode = #tpu.pipeline_mode<synchronous>, transform_indices = @transform_6, window_bounds = array<i64: 1, 32>}, {pipeline_mode = #tpu.pipeline_mode<synchronous>, transform_indices = @transform_7, window_bounds = array<i64: 1, 32>}, {pipeline_mode = #tpu.pipeline_mode<synchronous>, transform_indices = @transform_8, window_bounds = array<i64: 32, 64>}, {pipeline_mode = #tpu.pipeline_mode<synchronous>, transform_indices = @transform_9, window_bounds = array<i64: 1, 64>}, {pipeline_mode = #tpu.pipeline_mode<synchronous>, transform_indices = @transform_10, window_bounds = array<i64: 64, 32>}, {pipeline_mode = #tpu.pipeline_mode<synchronous>, transform_indices = @transform_11, window_bounds = array<i64: 1, 32>}, {pipeline_mode = #tpu.pipeline_mode<synchronous>, transform_indices = @transform_12, window_bounds = array<i64: 1, 32>}, {pipeline_mode = #tpu.pipeline_mode<synchronous>, transform_indices = @transform_13, window_bounds = array<i64: 1, 32>}, {transform_indices = @transform_14, window_bounds = array<i64: 1, 1, 8, 32>}]} {
    %c0_i32 = arith.constant 0 : i32
    %0 = arith.cmpi eq, %arg1, %c0_i32 : i32
    %1 = arith.extui %0 : i1 to i32
    %c0_i32_0 = arith.constant 0 : i32
    %2 = arith.cmpi ne, %1, %c0_i32_0 : i32
    scf.if %2 {
      %c0_60 = arith.constant 0 : index
      %c0_61 = arith.constant 0 : index
      %c0_62 = arith.constant 0 : index
      %110 = vector.load %arg2[%c0_60, %c0_61, %c0_62] : memref<1x8x32xf32, #tpu.memory_space<vmem>>, vector<1x8x32xf32>
      %111 = vector.shape_cast %110 : vector<1x8x32xf32> to vector<8x32xf32>
      %c0_63 = arith.constant 0 : index
      %c0_64 = arith.constant 0 : index
      %112 = vector.load %arg17[%c0_63, %c0_64] : memref<8x32xf32, #tpu.memory_space<vmem>>, vector<8x32xf32>
      tpu.vector_store %arg17[%c0_63, %c0_64], %111 {strides = array<i32>} : memref<8x32xf32, #tpu.memory_space<vmem>>, vector<8x32xf32>,
    } else {
    }
    %c0 = arith.constant 0 : index
    %c0_1 = arith.constant 0 : index
    %3 = vector.load %arg17[%c0, %c0_1] : memref<8x32xf32, #tpu.memory_space<vmem>>, vector<8x32xf32>
    %c0_2 = arith.constant 0 : index
    %c0_3 = arith.constant 0 : index
    %c0_4 = arith.constant 0 : index
    %4 = vector.load %arg3[%c0_2, %c0_3, %c0_4] : memref<1x1x8xf32, #tpu.memory_space<vmem>>, vector<1x1x8xf32>
    %5 = vector.shape_cast %4 : vector<1x1x8xf32> to vector<1x8xf32>
    %6 = vector.shape_cast %3 : vector<8x32xf32> to vector<1x8x32xf32>
    %7 = vector.broadcast %6 : vector<1x8x32xf32> to vector<4x8x32xf32>
    %c0_5 = arith.constant 0 : index
    %c0_6 = arith.constant 0 : index
    %c0_7 = arith.constant 0 : index
    %8 = vector.load %arg4[%c0_5, %c0_6, %c0_7] : memref<4x32x24xf32, #tpu.memory_space<vmem>>, vector<4x32x24xf32>
    %cst = arith.constant dense<0.000000e+00> : vector<4x8x24xf32>
    %9 = tpu.matmul %7, %8, %cst {dimension_numbers = #tpu.dot_dimension_numbers<[2], [1], [1], [2], [0, 0, 0, 1, 1, 2], [0], [0]>} : vector<4x8x32xf32>, vector<4x32x24xf32>, vector<4x8x24xf32> -> vector<4x8x24xf32>
    %c0_8 = arith.constant 0 : index
    %c0_9 = arith.constant 0 : index
    %c0_10 = arith.constant 0 : index
    %10 = vector.load %arg5[%c0_8, %c0_9, %c0_10] : memref<4x1x24xf32, #tpu.memory_space<vmem>>, vector<4x1x24xf32>
    %11 = vector.broadcast %10 : vector<4x1x24xf32> to vector<4x8x24xf32>
    %12 = arith.addf %9, %11 : vector<4x8x24xf32>
    %13 = vector.extract_strided_slice %12 {offsets = [0, 0, 0], sizes = [4, 8, 8], strides = [1, 1, 1]} : vector<4x8x24xf32> to vector<4x8x8xf32>
    %14 = vector.extract_strided_slice %12 {offsets = [0, 0, 8], sizes = [4, 8, 8], strides = [1, 1, 1]} : vector<4x8x24xf32> to vector<4x8x8xf32>
    %15 = vector.extract_strided_slice %12 {offsets = [0, 0, 16], sizes = [4, 8, 8], strides = [1, 1, 1]} : vector<4x8x24xf32> to vector<4x8x8xf32>
    %cst_11 = arith.constant dense<0.000000e+00> : vector<4x8x8xf32>
    %16 = tpu.matmul %13, %14, %cst_11 {dimension_numbers = #tpu.dot_dimension_numbers<[2], [2], [1], [1], [0, 0, 0, 1, 1, 1], [0], [0]>} : vector<4x8x8xf32>, vector<4x8x8xf32>, vector<4x8x8xf32> -> vector<4x8x8xf32>
    %17 = vector.shape_cast %5 : vector<1x8xf32> to vector<1x1x8xf32>
    %18 = vector.broadcast %17 : vector<1x1x8xf32> to vector<4x8x8xf32>
    %19 = arith.addf %16, %18 : vector<4x8x8xf32>
    %cst_12 = arith.constant dense<0xFF800000> : vector<4x8xf32>
    %20 = vector.multi_reduction <maximumf>, %19, %cst_12 [2] : vector<4x8x8xf32> to vector<4x8xf32>
    %21 = vector.shape_cast %20 : vector<4x8xf32> to vector<4x8x1xf32>
    %22 = vector.broadcast %21 : vector<4x8x1xf32> to vector<4x8x8xf32>
    %23 = arith.subf %19, %22 : vector<4x8x8xf32>
    %24 = math.exp %23 : vector<4x8x8xf32>
    %cst_13 = arith.constant dense<0.000000e+00> : vector<4x8xf32>
    %25 = vector.multi_reduction <add>, %24, %cst_13 [2] : vector<4x8x8xf32> to vector<4x8xf32>
    %26 = vector.shape_cast %25 : vector<4x8xf32> to vector<4x8x1xf32>
    %27 = tpu.reciprocal %26 {approx = true} : vector<4x8x1xf32> -> vector<4x8x1xf32>
    %28 = vector.broadcast %27 : vector<4x8x1xf32> to vector<4x8x8xf32>
    %29 = arith.mulf %24, %28 : vector<4x8x8xf32>
    %cst_14 = arith.constant dense<0.000000e+00> : vector<4x8x8xf32>
    %30 = tpu.matmul %29, %15, %cst_14 {dimension_numbers = #tpu.dot_dimension_numbers<[2], [1], [1], [2], [0, 0, 0, 1, 1, 2], [0], [0]>} : vector<4x8x8xf32>, vector<4x8x8xf32>, vector<4x8x8xf32> -> vector<4x8x8xf32>
    %c0_15 = arith.constant 0 : index
    %c0_16 = arith.constant 0 : index
    %c0_17 = arith.constant 0 : index
    %31 = vector.load %arg6[%c0_15, %c0_16, %c0_17] : memref<4x8x32xf32, #tpu.memory_space<vmem>>, vector<4x8x32xf32>
    %cst_18 = arith.constant dense<0.000000e+00> : vector<4x8x32xf32>
    %32 = tpu.matmul %30, %31, %cst_18 {dimension_numbers = #tpu.dot_dimension_numbers<[2], [1], [1], [2], [0, 0, 0, 1, 1, 2], [0], [0]>} : vector<4x8x8xf32>, vector<4x8x32xf32>, vector<4x8x32xf32> -> vector<4x8x32xf32>
    %cst_19 = arith.constant dense<0.000000e+00> : vector<8x32xf32>
    %33 = vector.multi_reduction <add>, %32, %cst_19 [0] : vector<4x8x32xf32> to vector<8x32xf32>
    %c0_20 = arith.constant 0 : index
    %c0_21 = arith.constant 0 : index
    %34 = vector.load %arg7[%c0_20, %c0_21] : memref<1x32xf32, #tpu.memory_space<vmem>>, vector<1x32xf32>
    %35 = vector.broadcast %34 : vector<1x32xf32> to vector<8x32xf32>
    %36 = arith.addf %33, %35 : vector<8x32xf32>
    %37 = arith.addf %36, %3 : vector<8x32xf32>
    %c0_22 = arith.constant 0 : index
    %c0_23 = arith.constant 0 : index
    %38 = vector.load %arg8[%c0_22, %c0_23] : memref<1x32xf32, #tpu.memory_space<vmem>>, vector<1x32xf32>
    %c0_24 = arith.constant 0 : index
    %c0_25 = arith.constant 0 : index
    %39 = vector.load %arg9[%c0_24, %c0_25] : memref<1x32xf32, #tpu.memory_space<vmem>>, vector<1x32xf32>
    %cst_26 = arith.constant dense<0.000000e+00> : vector<8xf32>
    %40 = vector.multi_reduction <add>, %37, %cst_26 [1] : vector<8x32xf32> to vector<8xf32>
    %41 = vector.shape_cast %40 : vector<8xf32> to vector<8x1xf32>
    %cst_27 = arith.constant 3.200000e+01 : f32
    %42 = vector.broadcast %cst_27 : f32 to vector<8x1xf32>
    %43 = arith.divf %41, %42 : vector<8x1xf32>
    %44 = vector.broadcast %43 : vector<8x1xf32> to vector<8x32xf32>
    %45 = arith.subf %37, %44 : vector<8x32xf32>
    %46 = arith.mulf %45, %45 : vector<8x32xf32>
    %cst_28 = arith.constant dense<0.000000e+00> : vector<8xf32>
    %47 = vector.multi_reduction <add>, %46, %cst_28 [1] : vector<8x32xf32> to vector<8xf32>
    %48 = vector.shape_cast %47 : vector<8xf32> to vector<8x1xf32>
    %cst_29 = arith.constant 3.200000e+01 : f32
    %49 = vector.broadcast %cst_29 : f32 to vector<8x1xf32>
    %50 = arith.divf %48, %49 : vector<8x1xf32>
    %cst_30 = arith.constant 9.99999996E-13 : f32
    %51 = vector.broadcast %cst_30 : f32 to vector<8x1xf32>
    %52 = arith.addf %50, %51 : vector<8x1xf32>
    %53 = math.rsqrt %52 : vector<8x1xf32>
    %54 = vector.broadcast %53 : vector<8x1xf32> to vector<8x32xf32>
    %55 = arith.mulf %45, %54 : vector<8x32xf32>
    %56 = vector.broadcast %38 : vector<1x32xf32> to vector<8x32xf32>
    %57 = arith.mulf %56, %55 : vector<8x32xf32>
    %58 = vector.broadcast %39 : vector<1x32xf32> to vector<8x32xf32>
    %59 = arith.addf %57, %58 : vector<8x32xf32>
    %c0_31 = arith.constant 0 : index
    %c0_32 = arith.constant 0 : index
    %60 = vector.load %arg10[%c0_31, %c0_32] : memref<32x64xf32, #tpu.memory_space<vmem>>, vector<32x64xf32>
    %cst_33 = arith.constant dense<0.000000e+00> : vector<8x64xf32>
    %61 = tpu.matmul %59, %60, %cst_33 {dimension_numbers = #tpu.dot_dimension_numbers<[1], [0], [0], [1], [0, 0, 1, 1], [], []>} : vector<8x32xf32>, vector<32x64xf32>, vector<8x64xf32> -> vector<8x64xf32>
    %c0_34 = arith.constant 0 : index
    %c0_35 = arith.constant 0 : index
    %62 = vector.load %arg11[%c0_34, %c0_35] : memref<1x64xf32, #tpu.memory_space<vmem>>, vector<1x64xf32>
    %63 = vector.broadcast %62 : vector<1x64xf32> to vector<8x64xf32>
    %64 = arith.addf %61, %63 : vector<8x64xf32>
    %cst_36 = arith.constant 5.000000e-01 : f32
    %65 = vector.broadcast %cst_36 : f32 to vector<8x64xf32>
    %66 = arith.mulf %65, %64 : vector<8x64xf32>
    %cst_37 = arith.constant 4.471500e-02 : f32
    %67 = vector.broadcast %cst_37 : f32 to vector<8x64xf32>
    %68 = arith.mulf %67, %64 : vector<8x64xf32>
    %69 = arith.mulf %68, %64 : vector<8x64xf32>
    %70 = arith.mulf %69, %64 : vector<8x64xf32>
    %71 = arith.addf %64, %70 : vector<8x64xf32>
    %cst_38 = arith.constant 0.797884583 : f32
    %72 = vector.broadcast %cst_38 : f32 to vector<8x64xf32>
    %73 = arith.mulf %72, %71 : vector<8x64xf32>
    %74 = math.tanh %73 : vector<8x64xf32>
    %cst_39 = arith.constant 1.000000e+00 : f32
    %75 = vector.broadcast %cst_39 : f32 to vector<8x64xf32>
    %76 = arith.addf %75, %74 : vector<8x64xf32>
    %77 = arith.mulf %66, %76 : vector<8x64xf32>
    %c0_40 = arith.constant 0 : index
    %c0_41 = arith.constant 0 : index
    %78 = vector.load %arg12[%c0_40, %c0_41] : memref<64x32xf32, #tpu.memory_space<vmem>>, vector<64x32xf32>
    %cst_42 = arith.constant dense<0.000000e+00> : vector<8x32xf32>
    %79 = tpu.matmul %77, %78, %cst_42 {dimension_numbers = #tpu.dot_dimension_numbers<[1], [0], [0], [1], [0, 0, 1, 1], [], []>} : vector<8x64xf32>, vector<64x32xf32>, vector<8x32xf32> -> vector<8x32xf32>
    %c0_43 = arith.constant 0 : index
    %c0_44 = arith.constant 0 : index
    %80 = vector.load %arg13[%c0_43, %c0_44] : memref<1x32xf32, #tpu.memory_space<vmem>>, vector<1x32xf32>
    %81 = vector.broadcast %80 : vector<1x32xf32> to vector<8x32xf32>
    %82 = arith.addf %79, %81 : vector<8x32xf32>
    %83 = arith.addf %82, %59 : vector<8x32xf32>
    %c0_45 = arith.constant 0 : index
    %c0_46 = arith.constant 0 : index
    %84 = vector.load %arg14[%c0_45, %c0_46] : memref<1x32xf32, #tpu.memory_space<vmem>>, vector<1x32xf32>
    %c0_47 = arith.constant 0 : index
    %c0_48 = arith.constant 0 : index
    %85 = vector.load %arg15[%c0_47, %c0_48] : memref<1x32xf32, #tpu.memory_space<vmem>>, vector<1x32xf32>
    %cst_49 = arith.constant dense<0.000000e+00> : vector<8xf32>
    %86 = vector.multi_reduction <add>, %83, %cst_49 [1] : vector<8x32xf32> to vector<8xf32>
    %87 = vector.shape_cast %86 : vector<8xf32> to vector<8x1xf32>
    %cst_50 = arith.constant 3.200000e+01 : f32
    %88 = vector.broadcast %cst_50 : f32 to vector<8x1xf32>
    %89 = arith.divf %87, %88 : vector<8x1xf32>
    %90 = vector.broadcast %89 : vector<8x1xf32> to vector<8x32xf32>
    %91 = arith.subf %83, %90 : vector<8x32xf32>
    %92 = arith.mulf %91, %91 : vector<8x32xf32>
    %cst_51 = arith.constant dense<0.000000e+00> : vector<8xf32>
    %93 = vector.multi_reduction <add>, %92, %cst_51 [1] : vector<8x32xf32> to vector<8xf32>
    %94 = vector.shape_cast %93 : vector<8xf32> to vector<8x1xf32>
    %cst_52 = arith.constant 3.200000e+01 : f32
    %95 = vector.broadcast %cst_52 : f32 to vector<8x1xf32>
    %96 = arith.divf %94, %95 : vector<8x1xf32>
    %cst_53 = arith.constant 9.99999996E-13 : f32
    %97 = vector.broadcast %cst_53 : f32 to vector<8x1xf32>
    %98 = arith.addf %96, %97 : vector<8x1xf32>
    %99 = math.rsqrt %98 : vector<8x1xf32>
    %100 = vector.broadcast %99 : vector<8x1xf32> to vector<8x32xf32>
    %101 = arith.mulf %91, %100 : vector<8x32xf32>
    %102 = vector.broadcast %84 : vector<1x32xf32> to vector<8x32xf32>
    %103 = arith.mulf %102, %101 : vector<8x32xf32>
    %104 = vector.broadcast %85 : vector<1x32xf32> to vector<8x32xf32>
    %105 = arith.addf %103, %104 : vector<8x32xf32>
    %c0_54 = arith.constant 0 : index
    %c0_55 = arith.constant 0 : index
    %106 = vector.load %arg17[%c0_54, %c0_55] : memref<8x32xf32, #tpu.memory_space<vmem>>, vector<8x32xf32>
    tpu.vector_store %arg17[%c0_54, %c0_55], %105 {strides = array<i32>} : memref<8x32xf32, #tpu.memory_space<vmem>>, vector<8x32xf32>,
    %c0_56 = arith.constant 0 : index
    %c0_57 = arith.constant 0 : index
    %c0_58 = arith.constant 0 : index
    %c0_59 = arith.constant 0 : index
    %107 = vector.load %arg16[%c0_56, %c0_57, %c0_58, %c0_59] : memref<1x1x8x32xf32, #tpu.memory_space<vmem>>, vector<1x1x8x32xf32>
    %108 = vector.shape_cast %107 : vector<1x1x8x32xf32> to vector<8x32xf32>
    %109 = vector.shape_cast %105 : vector<8x32xf32> to vector<1x1x8x32xf32>
    tpu.vector_store %arg16[%c0_56, %c0_57, %c0_58, %c0_59], %109 {strides = array<i32>} : memref<1x1x8x32xf32, #tpu.memory_space<vmem>>, vector<1x1x8x32xf32>,
    return
  }
  func.func @transform_0(%arg0: i32, %arg1: i32) -> (i32, i32, i32) {
    %c0_i32 = arith.constant 0 : i32
    %c0_i32_0 = arith.constant 0 : i32
    %c0_i32_1 = arith.constant 0 : i32
    return %arg0, %c0_i32, %c0_i32_0 : i32, i32, i32
  }
  func.func @transform_1(%arg0: i32, %arg1: i32) -> (i32, i32, i32) {
    %c0_i32 = arith.constant 0 : i32
    %c0_i32_0 = arith.constant 0 : i32
    %c0_i32_1 = arith.constant 0 : i32
    return %arg0, %c0_i32, %c0_i32_0 : i32, i32, i32
  }
  func.func @transform_2(%arg0: i32, %arg1: i32) -> (i32, i32, i32) {
    %c0_i32 = arith.constant 0 : i32
    %c0_i32_0 = arith.constant 0 : i32
    %c0_i32_1 = arith.constant 0 : i32
    %c0_i32_2 = arith.constant 0 : i32
    return %c0_i32, %c0_i32_0, %c0_i32_1 : i32, i32, i32
  }
  func.func @transform_3(%arg0: i32, %arg1: i32) -> (i32, i32, i32) {
    %c0_i32 = arith.constant 0 : i32
    %c0_i32_0 = arith.constant 0 : i32
    %c0_i32_1 = arith.constant 0 : i32
    %c0_i32_2 = arith.constant 0 : i32
    return %c0_i32, %c0_i32_0, %c0_i32_1 : i32, i32, i32
  }
  func.func @transform_4(%arg0: i32, %arg1: i32) -> (i32, i32, i32) {
    %c0_i32 = arith.constant 0 : i32
    %c0_i32_0 = arith.constant 0 : i32
    %c0_i32_1 = arith.constant 0 : i32
    %c0_i32_2 = arith.constant 0 : i32
    return %c0_i32, %c0_i32_0, %c0_i32_1 : i32, i32, i32
  }
  func.func @transform_5(%arg0: i32, %arg1: i32) -> (i32, i32) {
    %c0_i32 = arith.constant 0 : i32
    %c0_i32_0 = arith.constant 0 : i32
    %c0_i32_1 = arith.constant 0 : i32
    return %c0_i32, %c0_i32_0 : i32, i32
  }
  func.func @transform_6(%arg0: i32, %arg1: i32) -> (i32, i32) {
    %c0_i32 = arith.constant 0 : i32
    %c0_i32_0 = arith.constant 0 : i32
    %c0_i32_1 = arith.constant 0 : i32
    return %c0_i32, %c0_i32_0 : i32, i32
  }
  func.func @transform_7(%arg0: i32, %arg1: i32) -> (i32, i32) {
    %c0_i32 = arith.constant 0 : i32
    %c0_i32_0 = arith.constant 0 : i32
    %c0_i32_1 = arith.constant 0 : i32
    return %c0_i32, %c0_i32_0 : i32, i32
  }
  func.func @transform_8(%arg0: i32, %arg1: i32) -> (i32, i32) {
    %c0_i32 = arith.constant 0 : i32
    %c0_i32_0 = arith.constant 0 : i32
    %c0_i32_1 = arith.constant 0 : i32
    return %c0_i32, %c0_i32_0 : i32, i32
  }
  func.func @transform_9(%arg0: i32, %arg1: i32) -> (i32, i32) {
    %c0_i32 = arith.constant 0 : i32
    %c0_i32_0 = arith.constant 0 : i32
    %c0_i32_1 = arith.constant 0 : i32
    return %c0_i32, %c0_i32_0 : i32, i32
  }
  func.func @transform_10(%arg0: i32, %arg1: i32) -> (i32, i32) {
    %c0_i32 = arith.constant 0 : i32
    %c0_i32_0 = arith.constant 0 : i32
    %c0_i32_1 = arith.constant 0 : i32
    return %c0_i32, %c0_i32_0 : i32, i32
  }
  func.func @transform_11(%arg0: i32, %arg1: i32) -> (i32, i32) {
    %c0_i32 = arith.constant 0 : i32
    %c0_i32_0 = arith.constant 0 : i32
    %c0_i32_1 = arith.constant 0 : i32
    return %c0_i32, %c0_i32_0 : i32, i32
  }
  func.func @transform_12(%arg0: i32, %arg1: i32) -> (i32, i32) {
    %c0_i32 = arith.constant 0 : i32
    %c0_i32_0 = arith.constant 0 : i32
    %c0_i32_1 = arith.constant 0 : i32
    return %c0_i32, %c0_i32_0 : i32, i32
  }
  func.func @transform_13(%arg0: i32, %arg1: i32) -> (i32, i32) {
    %c0_i32 = arith.constant 0 : i32
    %c0_i32_0 = arith.constant 0 : i32
    %c0_i32_1 = arith.constant 0 : i32
    return %c0_i32, %c0_i32_0 : i32, i32
  }
  func.func @transform_14(%arg0: i32, %arg1: i32) -> (i32, i32, i32, i32) {
    %c0_i32 = arith.constant 0 : i32
    %c0_i32_0 = arith.constant 0 : i32
    %c0_i32_1 = arith.constant 0 : i32
    return %arg1, %arg0, %c0_i32, %c0_i32_0 : i32, i32, i32, i32
  }
}

</mosaic_0001>

<bundles_post_ra>
// kernel: tpu_custom_call.1
= control target key start
LH: loop header
LB: loop body
LE: loop exit
PB: predicated region body
PF: predicated region fallthrough
CT: control target
= control target key end

     0   :  { %s1895_s0 = inlined_call_operand.vmem [shape: f32[2,8,32], index: 0, kind: input, shape index: {}]   ;;  %s1896_s1 = inlined_call_operand.vmem [shape: f32[2,1,8], index: 1, kind: input, shape index: {}]   ;;  %s1897_s2 = inlined_call_operand.vmem [shape: f32[4,32,24], index: 2, kind: input, shape index: {}]   ;;  %s1898_s3 = inlined_call_operand.vmem [shape: f32[4,1,24], index: 3, kind: input, shape index: {}]   ;;  %s1899_s4 = inlined_call_operand.vmem [shape: f32[4,8,32], index: 4, kind: input, shape index: {}]   ;;  %s1900_s5 = inlined_call_operand.vmem [shape: f32[1,32], index: 5, kind: input, shape index: {}]   ;;  %s1901_s6 = inlined_call_operand.vmem [shape: f32[1,32], index: 6, kind: input, shape index: {}]   ;;  %s1902_s7 = inlined_call_operand.vmem [shape: f32[1,32], index: 7, kind: input, shape index: {}]   ;;  %s1903_s8 = inlined_call_operand.vmem [shape: f32[32,64], index: 8, kind: input, shape index: {}]   ;;  %s1904_s9 = inlined_call_operand.vmem [shape: f32[1,64], index: 9, kind: input, shape index: {}]   ;;  %s1905_s10 = inlined_call_operand.vmem [shape: f32[64,32], index: 10, kind: input, shape index: {}]   ;;  %s1906_s11 = inlined_call_operand.vmem [shape: f32[1,32], index: 11, kind: input, shape index: {}]   ;;  %s1907_s12 = inlined_call_operand.vmem [shape: f32[1,32], index: 12, kind: input, shape index: {}]   ;;  %s1908_s13 = inlined_call_operand.vmem [shape: f32[1,32], index: 13, kind: input, shape index: {}]   ;;  %s1909_s14 = inlined_call_operand.hbm [shape: f32[2,2,8,32], index: 14, kind: output, shape index: {}]  }
   0x1   :  { %1922 = sst [smem:[#allocation16_spill]] %s1908_s13 }
   0x2   :  { %19 = vsyncpa [#allocation4], 0 }
   0x3   :  { %21 = vsyncpa [#allocation4 + $0x1], 0  ;;  %s1563_s29 = smov 0   ;;  %s1565_s30 = smov 0  }
   0x4   :  { %s1567_s15 = smov 0   ;;  %s1569_s16 = smov 0  }
   0x5   :  { %s1571_s17 = smov 0   ;;  %s1573_s18 = smov 0  }
   0x6   :  { %s1575_s19 = smov 0   ;;  %s1577_s20 = smov 0  }
   0x7 LB: > { %1923 = sst [smem:[#allocation6_spill]] %s1455_s29  ;;  %s1234_s21 = sadd.s32 4294967295, %s1483_s20   ;;  %s1483_s20 = sphi %s1577_s20, %s27_s20   ;;  %s1479_s19 = sphi %s1575_s19, %s1946_s19   ;;  %s1475_s18 = sphi %s1573_s18, %s1945_s18   ;;  %s1471_s17 = sphi %s1571_s17, %s1944_s17   ;;  %s1467_s16 = sphi %s1569_s16, %s1943_s16   ;;  %s1463_s15 = sphi %s1567_s15, %s1942_s15   ;;  %s1459_s30 = sphi %s1565_s30, %s1948_s30   ;;  %s1455_s29 = sphi %s1563_s29, %s1947_s29  }
   0x8   : > { %1924 = sst [smem:[#allocation7_spill]] %s1463_s15  ;;  %s1235_s22 = sadd.s32 4294967294, %s1483_s20  }
   0x9   : > { %1925 = sst [smem:[#allocation8_spill]] %s1475_s18  ;;  %s36_s23 = sadd.s32 1, %s1475_s18 }
   0xa   : > { %1926 = sst [smem:[#allocation9_spill]] %s1479_s19  ;;  %p37_p0 = scmp.ge.s32.totalorder %s36_s23, 2 }
   0xb   : > { %1927 = sst [smem:[#allocation10_spill]] %s1483_s20  ;;  %s39_s24 = sadd.s32 1, %s1479_s19 }
   0xc   : > { %p362_p1 = scmp.ne.s32.totalorder %s1463_s15, %s1459_s30  ;;  %p363_p2 = scmp.eq.s32.totalorder %s1234_s21, 3 }
   0xd   : > { %s1950_s23 = smov (%p37_p0, %s36_s23), 0  ;;  %s1952_s24 = smov (!%p37_p0, %s39_s24), %s1479_s19 }
   0xe   : > { %1928 = sst [smem:[#allocation11_spill]] %s1950_s23  ;;  %s347_s25 = ssub.s32 %s1475_s18, %s1950_s23 }
   0xf   : > { %p1614_p3 = por %p363_p2, %p362_p1  ;;  %p41_p4 = scmp.ge.s32.totalorder %s1952_s24, 2 }
  0x10   : > { %p368_p5 = scmp.ne.s32.totalorder %s1459_s30, %s1455_s29  ;;  %p369_p6 = scmp.eq.s32.totalorder %s1235_s22, 3 }
  0x11   : > { %s1929_s26 = scalar_select %p1614_p3, 1, 0 }
  0x12   : > { %p1238_p7 = scmp.ge.s32.totalorder %s1483_s20, 1  ;;  %s1954_s24 = smov (%p41_p4, %s1952_s24), 0 }
  0x13   : > { %1930 = sst [smem:[#allocation12_spill]] %s1929_s26  ;;  %p1623_p8 = por %p369_p6, %p368_p5 }
  0x14   : > { %1931 = sst [smem:[#allocation13_spill]] %s1954_s24  ;;  %p436_p9 = scmp.lt.s32.totalorder %s1483_s20, 5 }
  0x15   : > { %s1932_s27 = scalar_select %p1623_p8, 1, 0 }
  0x16   : > { %s348_s28 = ssub.s32 %s1479_s19, %s1954_s24  ;;  %s352_s21 = sadd.s32 1, %s1463_s15 }
  0x17   : > { %1933 = sst [smem:[#allocation14_spill]] %s1932_s27  ;;  %s349_s13 = sor.u32 %s348_s28, %s347_s25 }
  0x18   : > { %p437_p10 = pnand %p1238_p7, %p436_p9  ;;  %p350_p11 = scmp.eq.s32.totalorder %s349_s13, 0 }
  0x19   : > { %s1916_s22 = sand.u32 (!%p437_p10), 1, %s1459_s30   ;;  %p484_p12 = scmp.lt.s32.totalorder (!%p437_p10), %s1471_s17, 1 }
  0x1a   : > { %s1632_s23 = scalar_select %p350_p11, %s1463_s15, %s352_s21  }
  0x1b   : > { %440 = sbr.rel (%p437_p10) target bundleno = 1860 (0x744), region = 76  ;;  %s1638_s18 = sshll.u32 (!%p437_p10), %s1916_s22, 3 }
  0x1c   : > { %1934 = sst [smem:[#allocation15_spill]] %s1632_s23  ;;  %s483_s15 = scalar_lea.vmem (!%p437_p10), [#allocation3], %s1638_s18 }
  0x1d   : > { %p1241_p13 = scmp.ne.s32.totalorder (!%p437_p10), %s1467_s16, 0 }
  0x20   : > { %s1641_s27 = scalar_select %p484_p12, %s1471_s17, 1 }
  0x21   : > { %494 = sbr.rel (%p1241_p13) target bundleno = 40 (0x28), region = 80 }
  0x22   : > { %s1240_s25 = sshll.u32 %s1641_s27, 3  ;;  %s490_s21 = scalar_lea.vmem %s1896_s1, %s1641_s27 }
  0x23   : > { %s487_s23 = scalar_lea.vmem %s1895_s0, %s1240_s25 }
  0x26   : > { %v495_v0 = vld [vmem:[%s487_s23] sm:$0xff]  ;;  %vm496_vm0 = vcmask 261120  }
  0x27   : > { %497 = vst.msk [vmem:[#allocation2] sm:$0xff] %vm496_vm0, %v495_v0 }
  0x28 PF: > { %v503_v1 = vld [vmem:[%s1897_s2 + $0x18] sm:$0xff]  ;;  %v502_v3 = vld [vmem:[%s1897_s2 + $0x10] sm:$0xff]  ;;  %v501_v5 = vld [vmem:[%s1897_s2 + $0x8] sm:$0xff]  ;;  %vm532_vm1 = vcmask 261120   ;;  %s1485_s28 = smov 120   ;;  %vm622_vm2 = vcmask 64512  }
  0x29   : > { %v507_v2 = vld [vmem:[%s1897_s2 + $0x38] sm:$0xff]  ;;  %548 = vmatpush.msra.mxu0 %v503_v1  ;;  %v506_v4 = vld [vmem:[%s1897_s2 + $0x30] sm:$0xff]  ;;  %v505_v6 = vld [vmem:[%s1897_s2 + $0x28] sm:$0xff]  ;;  %s1486_s27 = smov 112   ;;  %vm1076_vm7 = vcmask 523264   ;;  %s1265_s23 = sshll.u32 %s1467_s16, 1 }
  0x2a   : > { %568 = vmatpush.msra.mxu2 %v507_v2  ;;  %v515_v7 = vld [vmem:[%s1897_s2 + $0x78] sm:$0xff]  ;;  %v500_v8 = vld [vmem:[%s1897_s2] sm:$0xff]  ;;  %v514_v10 = vld [vmem:[%s1897_s2 + $0x70] sm:$0xff]  ;;  %s1146_s25 = sadd.s32 %s1471_s17, %s1265_s23  ;;  %s1936_s13 = sld [smem:[#allocation16_spill]] }
  0x2b   : > { %549 = vmatpush.msra.mxu0 %v502_v3  ;;  %v504_v9 = vld [vmem:[%s1897_s2 + $0x20] sm:$0xff]  ;;  %608 = vmatpush.msra.mxu3 %v515_v7  ;;  %v511_v12 = vld [vmem:[%s1897_s2 + $0x58] sm:$0xff]  ;;  %v510_v13 = vld [vmem:[%s1897_s2 + $0x50] sm:$0xff]  ;;  %s1266_s29 = sshll.u32 %s1146_s25, 3  ;;  %s1150_s19 = sshll.u32 %s483_s15, 4  ;;  %s1151_s19 = int_to_ptr.vmem [resolvable:$true] %s1150_s19 }
  0x2c   : > { %569 = vmatpush.msra.mxu2 %v506_v4  ;;  %v513_v14 = vld [vmem:[%s1897_s2 + $0x68] sm:$0xff]  ;;  %v512_v15 = vld [vmem:[%s1897_s2 + $0x60] sm:$0xff]  ;;  %s1148_s16 = scalar_lea.hbm %s1909_s14, %s1266_s29  ;;  %s1937_s23 = sand.u32 1, %s1459_s30  }
  0x2d   : > { %550 = vmatpush.msra.mxu0 %v501_v5  ;;  %609 = vmatpush.msra.mxu3 %v514_v10  ;;  %v509_v16 = vld [vmem:[%s1897_s2 + $0x48] sm:$0xff]  ;;  %v508_v17 = vld [vmem:[%s1897_s2 + $0x40] sm:$0xff]  ;;  %s1152_s24 = sshll.u32 %s1148_s16, 4  ;;  %s1136_s25 = scalar_lea.sflag [#allocation4], %s1937_s23  ;;  %s1153_s24 = int_to_ptr.hbm [resolvable:$true] %s1152_s24 }
  0x2e   : > { %570 = vmatpush.msra.mxu2 %v505_v6  ;;  %v1683_v11 = vld [vmem:[#allocation2] sm:$0xff]  ;;  %s1403_s29 = sshra.s32 %s1153_s24, 4  ;;  %s1404_s29 = int_to_ptr.hbm [resolvable:$true] %s1403_s29 }
  0x2f   : > { %551 = vmatpush.msra.mxu0 %v500_v8  ;;  %610 = vmatpush.msra.mxu3 %v513_v14  ;;  %v1353_v18 = vld [vmem:[%s1898_s3] ss:$0 sm:$0xff]  ;;  %v1354_v21 = vld [vmem:[%s1898_s3 + $0x1] ss:$0 sm:$0xff]  ;;  %v1355_v24 = vld [vmem:[%s1898_s3 + $0x2] ss:$0 sm:$0xff]  ;;  %p1410_p4 = scmp.lt.s32.totalorder %s1404_s29, %s1909_s14 }
  0x30   : > { %571 = vmatpush.msra.mxu2 %v504_v9  ;;  %1242 = vmatmul.msk.f32.vlgmr.msra.gmra.mxu0 %vm532_vm1, %v1683_v11  ;;  %v1356_v27 = vld [vmem:[%s1898_s3 + $0x3] ss:$0 sm:$0xff]  ;;  %v1357_v34 = vld [vmem:[%s490_s21] ss:$0 sm:$0xff]  ;;  %s1405_s22 = scalar_lea.hbm %s1404_s29, 8  ;;  %s1409_s21 = scalar_lea.hbm %s1909_s14, 32 }
  0x31   : > { %1243 = vmatmul.msk.f32.vlgmr.msra.gmra.mxu2 %vm532_vm1, %v1683_v11  ;;  %611 = vmatpush.msra.mxu3 %v512_v15  ;;  %p1406_p0 = scmp.ne.s32.totalorder %s1404_s29, %s1405_s22  ;;  %p1411_p5 = scmp.lt.s32.totalorder %s1409_s21, %s1405_s22 }
  0x32   : > { %588 = vmatpush.msrb.mxu2 %v511_v12  ;;  %1245 = vmatmul.msk.f32.vlgmr.msra.gmra.mxu3 %vm532_vm1, %v1683_v11 }
  0x33   : > { %p1407_p1 = pnand %p1406_p0, %p1614_p3  ;;  %p1412_p6 = por %p1411_p5, %p1410_p4 }
  0x34   : > { %589 = vmatpush.msrb.mxu2 %v510_v13 }
  0x35   : > { %p1408_p2 = pneg %p1407_p1 }
  0x36   : > { %590 = vmatpush.msrb.mxu2 %v509_v16 }
  0x37   : > { %p1413_p7 = pnand %p1412_p6, %p1408_p2 }
  0x38   : > { %591 = vmatpush.msrb.mxu2 %v508_v17 }
  0x39   : > { %1244 = vmatmul.msk.f32.vlgmr.msrb.gmra.mxu2 %vm532_vm1, %v1683_v11 }
  0xad   : > { %v553_v19 = vpop.f32.mrf.mxu0 }
  0xae   : > { %v554_v20 = vadd.f32 %v1353_v18, %v553_v19 }
  0xb0   : > { %620 = vrot.lane.b32.xlu1 %v554_v20, %s1485_s28 }
  0xb4   : > { %v573_v22 = vpop.f32.mrf.mxu2 }
  0xb5   : > { %v574_v23 = vadd.f32 %v1354_v21, %v573_v22  ;;  %v613_v28 = vpop.f32.mrf.mxu3 }
  0xb6   : > { %v614_v29 = vadd.f32 %v1356_v27, %v613_v28  ;;  %v879_v27 = vld [vmem:[%s1899_s4 + $0x18] sm:$0xff]  ;;  %v876_v28 = vld [vmem:[%s1899_s4] sm:$0xff] }
  0xb7   : > { %v1348_v46 = vpack.i.bf16 %v574_v23, %v554_v20 }
  0xb8   : > { %648 = vrot.lane.b32.xlu1 %v574_v23, %s1485_s28 }
  0xbc   : > { %v593_v25 = vpop.f32.mrf.mxu2 }
  0xbd   : > { %v1720_v26 = vadd.f32 %v1355_v24, %v593_v25  ;;  %v877_v24 = vld [vmem:[%s1899_s4 + $0x8] sm:$0xff] }
  0xbf   : > { %675 = vrot.lane.b32.xlu0 %v1720_v26, %s1485_s28  ;;  %v1343_v2 = vpack.i.bf16 %v614_v29, %v1720_v26 }
  0xc7   : > { %702 = vrot.lane.b32.xlu0 %v614_v29, %s1485_s28 }
 0x122   : > { %v621_v30 = vpop.permute.xlu1 %620 }
 0x123   : > { %1246 = vmatpush.xpose.msk.msrb.mxu0 %vm622_vm2, %v621_v30 }
 0x126   : > { %1247 = vmatmul.msk.f32.vlgmr.msrb.gmra.mxu0 %vm622_vm2, %v554_v20 }
 0x12a   : > { %v649_v31 = vpop.permute.xlu1 %648 }
 0x12b   : > { %1248 = vmatpush.xpose.msk.msra.mxu1 %vm622_vm2, %v649_v31 }
 0x12e   : > { %1249 = vmatmul.msk.f32.vlgmr.msra.gmra.mxu1 %vm622_vm2, %v574_v23 }
 0x131   : > { %v676_v32 = vpop.permute.xlu0 %675 }
 0x132   : > { %1250 = vmatpush.xpose.msk.msra.mxu2 %vm622_vm2, %v676_v32 }
 0x135   : > { %1251 = vmatmul.msk.f32.vlgmr.msra.gmra.mxu2 %vm622_vm2, %v1720_v26  ;;  %v878_v26 = vld [vmem:[%s1899_s4 + $0x10] sm:$0xff] }
 0x139   : > { %v703_v33 = vpop.permute.xlu0 %702 }
 0x13a   : > { %1252 = vmatpush.xpose.msk.msrb.mxu3 %vm622_vm2, %v703_v33 }
 0x13d   : > { %1253 = vmatmul.msk.f32.vlgmr.msrb.gmra.mxu3 %vm622_vm2, %v614_v29 }
 0x1a3   : > { %v644_v35 = vpop.f32.mrf.mxu0 }
 0x1a4   : > { %v645_v36 = vadd.f32 %v1357_v34, %v644_v35 }
 0x1a6   : > { %v728_v37 = vsel %vm622_vm2, %v645_v36, -inf }
 0x1a7   : > { %729 = vmax.xlane.f32.xlu0 %v728_v37 }
 0x1ab   : > { %v671_v38 = vpop.f32.mrf.mxu1 }
 0x1ac   : > { %v672_v39 = vadd.f32 %v1357_v34, %v671_v38 }
 0x1ae   : > { %v731_v40 = vsel %vm622_vm2, %v672_v39, -inf }
 0x1af   : > { %732 = vmax.xlane.f32.xlu1 %v731_v40 }
 0x1b8   : > { %v698_v44 = vpop.f32.mrf.mxu2 }
 0x1b9   : > { %v699_v45 = vadd.f32 %v1357_v34, %v698_v44 }
 0x1bb   : > { %v734_v47 = vsel %vm622_vm2, %v699_v45, -inf }
 0x1c0   : > { %v725_v41 = vpop.f32.mrf.mxu3 }
 0x1c1   : > { %v726_v42 = vadd.f32 %v1357_v34, %v725_v41  ;;  %v1358_v41 = vld [vmem:[%s1900_s5] ss:$0 sm:$0xff] }
 0x1c3   : > { %v737_v43 = vsel %vm622_vm2, %v726_v42, -inf }
 0x1c4   : > { %738 = vmax.xlane.f32.xlu2 %v737_v43 }
 0x1c8   : > { %1349 = vrot.lane.b32.xlu1 %v1348_v46, %s1486_s27 }
 0x1cc   : > { %735 = vmax.xlane.f32.xlu2 %v734_v47  ;;  %v1487_v47 = vmov 32.0  }
 0x21a   : > { %v730_v3 = vpop.xlane.xlu0 %729 }
 0x21b   : > { %v740_v4 = vsub.f32 %v645_v36, %v730_v3 }
 0x21d   : > { %v744_v5 = vmul.f32 1.442695, %v740_v4 }
 0x222   : > { %v733_v48 = vpop.xlane.xlu1 %732 }
 0x223   : > { %v741_v49 = vsub.f32 %v672_v39, %v733_v48 }
 0x225   : > { %v746_v50 = vmul.f32 1.442695, %v741_v49 }
 0x227   : > { %1365 = vpow2.f32 %v746_v50 }
 0x22d   : > { %v1366_v51 = vpop.eup %1365 }
 0x22e   : > { %v755_v52 = vsel %vm622_vm2, %v1366_v51, 0.0 }
 0x22f   : > { %756 = vadd.xlane.f32.xlu0 %v755_v52 }
 0x237   : > { %v739_v53 = vpop.xlane.xlu2 %738 }
 0x238   : > { %v743_v54 = vsub.f32 %v726_v42, %v739_v53 }
 0x23a   : > { %v750_v55 = vmul.f32 1.442695, %v743_v54  ;;  %v1350_v56 = vpop.permute.xlu1 %1349 }
 0x23b   : > { %v1351_v57 = vunpack.i.l.bf16 %v1350_v56  ;;  %v1352_v58 = vunpack.i.h.bf16 %v1350_v56 }
 0x23c   : > { %1367 = vpow2.f32 %v750_v55 }
 0x23d   : > { %793 = vmatpush.msra.mxu0 %v1351_v57  ;;  %819 = vmatpush.msrb.mxu1 %v1352_v58  ;;  %v1027_v58 = vld [vmem:[%s1903_s8 + $0x18] sm:$0xff] }
 0x23f   : > { %v736_v59 = vpop.xlane.xlu2 %735  ;;  %921 = vmatpush.msra.mxu1 %v877_v24  ;;  %898 = vmatpush.msrb.mxu0 %v876_v28 }
 0x240   : > { %v742_v60 = vsub.f32 %v699_v45, %v736_v59  ;;  %v1026_v59 = vld [vmem:[%s1903_s8 + $0x10] sm:$0xff] }
 0x242   : > { %v1368_v61 = vpop.eup %1367  ;;  %v748_v62 = vmul.f32 1.442695, %v742_v60  ;;  %v1025_v60 = vld [vmem:[%s1903_s8 + $0x8] sm:$0xff] }
 0x243   : > { %v761_v63 = vsel %vm622_vm2, %v1368_v61, 0.0 }
 0x244   : > { %1369 = vpow2.f32 %v748_v62  ;;  %762 = vadd.xlane.f32.xlu2 %v761_v63 }
 0x245   : > { %1371 = vpow2.f32 %v744_v5 }
 0x24a   : > { %v1370_v0 = vpop.eup %1369 }
 0x24b   : > { %v758_v1 = vsel %vm622_vm2, %v1370_v0, 0.0  ;;  %v1372_v6 = vpop.eup %1371 }
 0x24c   : > { %759 = vadd.xlane.f32.xlu2 %v758_v1  ;;  %v752_v7 = vsel %vm622_vm2, %v1372_v6, 0.0 }
 0x264   : > { %1344 = vrot.lane.b32.xlu2 %v1343_v2, %s1486_s27 }
 0x28d   : > { %753 = vadd.xlane.f32.xlu2 %v752_v7  ;;  %v1359_v7 = vld [vmem:[%s1901_s6] ss:$0 sm:$0xff] }
 0x2a2   : > { %v757_v8 = vpop.xlane.xlu0 %756 }
 0x2a3   : > { %1373 = vrcp.f32 %v757_v8 }
 0x2a9   : > { %v1374_v9 = vpop.eup %1373 }
 0x2aa   : > { %v769_v10 = vmul.f32 %v1374_v9, %v1366_v51 }
 0x2ac   : > { %1255 = vmatmul.msk.f32.vlgmr.msrb.gmra.mxu1 %vm622_vm2, %v769_v10  ;;  %v1360_v10 = vld [vmem:[%s1902_s7] ss:$0 sm:$0xff] }
 0x2b7   : > { %v763_v12 = vpop.xlane.xlu2 %762 }
 0x2b8   : > { %1375 = vrcp.f32 %v763_v12 }
 0x2be   : > { %v1376_v14 = vpop.eup %1375 }
 0x2bf   : > { %v760_v13 = vpop.xlane.xlu2 %759  ;;  %v771_v19 = vmul.f32 %v1376_v14, %v1368_v61  ;;  %v1024_v61 = vld [vmem:[%s1903_s8] sm:$0xff]  ;;  %v1071_v14 = vld [vmem:[%s1905_s10 + $0x38] sm:$0xff] }
 0x2c0   : > { %1377 = vrcp.f32 %v760_v13  ;;  %1088 = vmatpush.msrb.mxu1 %v1071_v14 }
 0x2c6   : > { %v1378_v15 = vpop.eup %1377 }
 0x2c7   : > { %v1345_v16 = vpop.permute.xlu2 %1344  ;;  %v770_v20 = vmul.f32 %v1378_v15, %v1370_v0  ;;  %v1070_v15 = vld [vmem:[%s1905_s10 + $0x30] sm:$0xff] }
 0x2c8   : > { %v1347_v17 = vunpack.i.h.bf16 %v1345_v16  ;;  %v1346_v18 = vunpack.i.l.bf16 %v1345_v16  ;;  %1089 = vmatpush.msrb.mxu1 %v1070_v15  ;;  %v1069_v16 = vld [vmem:[%s1905_s10 + $0x28] sm:$0xff] }
 0x2ca   : > { %845 = vmatpush.msrb.mxu2 %v1346_v18  ;;  %871 = vmatpush.msra.mxu3 %v1347_v17  ;;  %v1068_v17 = vld [vmem:[%s1905_s10 + $0x20] sm:$0xff]  ;;  %v1067_v18 = vld [vmem:[%s1905_s10 + $0x18] sm:$0xff] }
 0x2cb   : > { %1256 = vmatmul.msk.f32.vlgmr.msrb.gmra.mxu2 %vm622_vm2, %v770_v20  ;;  %1257 = vmatmul.msk.f32.vlgmr.msra.gmra.mxu3 %vm622_vm2, %v771_v19  ;;  %v1066_v19 = vld [vmem:[%s1905_s10 + $0x10] sm:$0xff]  ;;  %v1065_v20 = vld [vmem:[%s1905_s10 + $0x8] sm:$0xff] }
 0x2cc   : > { %944 = vmatpush.msra.mxu2 %v878_v26  ;;  %967 = vmatpush.msrb.mxu3 %v879_v27 }
 0x2cd   : > { %1090 = vmatpush.msrb.mxu1 %v1069_v16 }
 0x2cf   : > { %1091 = vmatpush.msrb.mxu1 %v1068_v17 }
 0x2d1   : > { %1092 = vmatpush.msrb.mxu1 %v1067_v18 }
 0x2d3   : > { %1093 = vmatpush.msrb.mxu1 %v1066_v19 }
 0x2d5   : > { %1094 = vmatpush.msrb.mxu1 %v1065_v20 }
 0x300   : > { %v754_v21 = vpop.xlane.xlu2 %753 }
 0x301   : > { %1379 = vrcp.f32 %v754_v21  ;;  %v1064_v21 = vld [vmem:[%s1905_s10] sm:$0xff] }
 0x302   : > { %1381 = vrcp.f32 %v1487_v47  ;;  %1095 = vmatpush.msrb.mxu1 %v1064_v21 }
 0x307   : > { %v1380_v22 = vpop.eup %1379 }
 0x308   : > { %v768_v23 = vmul.f32 %v1380_v22, %v1372_v6  ;;  %v1382_v48 = vpop.eup %1381  ;;  %v1361_v22 = vld [vmem:[%s1904_s9] ss:$0 sm:$0xff] }
 0x309   : > { %v991_v49 = vmul.f32 32.0, %v1382_v48  ;;  %vm995_vm3 = vweird.f32 %v1382_v48 }
 0x30a   : > { %1254 = vmatmul.msk.f32.vlgmr.msra.gmra.mxu0 %vm622_vm2, %v768_v23 }
 0x30b   : > { %v992_v50 = vsub.f32 1.0, %v991_v49  ;;  %1047 = vmatpush.msra.mxu0 %v1027_v58 }
 0x30d   : > { %v993_v51 = vmul.f32 %v1382_v48, %v992_v50  ;;  %1048 = vmatpush.msra.mxu0 %v1026_v59 }
 0x30f   : > { %v994_v52 = vadd.f32 %v1382_v48, %v993_v51  ;;  %1049 = vmatpush.msra.mxu0 %v1025_v60 }
 0x311   : > { %v1780_v53 = vsel %vm995_vm3, %v1382_v48, %v994_v52  ;;  %1050 = vmatpush.msra.mxu0 %v1024_v61 }
 0x329   : > { %v821_v25 = vpop.f32.mrf.mxu1 }
 0x32a   : > { %1259 = vmatmul.msk.f32.vlgmr.msra.gmra.mxu1 %vm622_vm2, %v821_v25 }
 0x34e   : > { %v847_v29 = vpop.f32.mrf.mxu2  ;;  %v873_v30 = vpop.f32.mrf.mxu3 }
 0x34f   : > { %1260 = vmatmul.msk.f32.vlgmr.msra.gmra.mxu2 %vm622_vm2, %v847_v29  ;;  %1261 = vmatmul.msk.f32.vlgmr.msrb.gmra.mxu3 %vm622_vm2, %v873_v30 }
 0x387   : > { %v795_v31 = vpop.f32.mrf.mxu0 }
 0x388   : > { %1258 = vmatmul.msk.f32.vlgmr.msrb.gmra.mxu0 %vm622_vm2, %v795_v31 }
 0x3a7   : > { %v923_v32 = vpop.f32.mrf.mxu1 }
 0x3a8   : > { %v973_v35 = vsel %vm532_vm1, %v923_v32, 0.0 }
 0x3d2   : > { %v946_v33 = vpop.f32.mrf.mxu2  ;;  %v969_v37 = vpop.f32.mrf.mxu3 }
 0x3d3   : > { %v975_v39 = vsel %vm532_vm1, %v946_v33, 0.0  ;;  %v977_v42 = vsel %vm532_vm1, %v969_v37, 0.0 }
 0x405   : > { %v900_v34 = vpop.f32.mrf.mxu0 }
 0x406   : > { %v972_v36 = vsel %vm532_vm1, %v900_v34, 0.0  ;;  %v1362_v34 = vld [vmem:[%s1906_s11] ss:$0 sm:$0xff] }
 0x407   : > { %v974_v38 = vadd.f32 %v973_v35, %v972_v36 }
 0x409   : > { %v976_v40 = vadd.f32 %v975_v39, %v974_v38 }
 0x40b   : > { %v978_v43 = vadd.f32 %v977_v42, %v976_v40 }
 0x40d   : > { %v983_v44 = vadd.f32 %v1358_v41, %v978_v43 }
 0x40f   : > { %v984_v45 = vadd.f32 %v983_v44, %v1683_v11 }
 0x411   : > { %v987_v46 = vsel %vm532_vm1, %v984_v45, 0.0 }
 0x412   : > { %988 = vadd.xlane.f32.xlu0 %v987_v46 }
 0x485   : > { %v989_v54 = vpop.xlane.xlu0 %988 }
 0x486   : > { %v997_v55 = vmul.f32 %v1780_v53, %v989_v54 }
 0x488   : > { %v998_v56 = vsub.f32 %v984_v45, %v997_v55 }
 0x48a   : > { %v999_v57 = vmul.f32 %v998_v56, %v998_v56 }
 0x48c   : > { %v1000_v11 = vsel %vm532_vm1, %v999_v57, 0.0 }
 0x48d   : > { %1001 = vadd.xlane.f32.xlu0 %v1000_v11 }
 0x500   : > { %v1002_v62 = vpop.xlane.xlu0 %1001 }
 0x501   : > { %v1003_v63 = vmul.f32 %v1002_v62, %v1780_v53 }
 0x503   : > { %v1004_v0 = vadd.f32 1e-12, %v1003_v63 }
 0x505   : > { %1383 = vrsqrt.f32 %v1004_v0  ;;  %vm1011_vm5 = vweird.f32 %v1004_v0 }
 0x50b   : > { %v1384_v1 = vpop.eup %1383 }
 0x50c   : > { %v1006_v2 = vmul.f32 %v1384_v1, %v1004_v0  ;;  %vm1012_vm4 = vweird.f32 %v1384_v1 }
 0x50d   : > { %vm1013_vm6 = vmor %vm1011_vm5, %vm1012_vm4 }
 0x50e   : > { %v1007_v3 = vmul.f32 %v1384_v1, %v1006_v2 }
 0x510   : > { %v1008_v4 = vmul.f32 0.5, %v1007_v3 }
 0x512   : > { %v1009_v5 = vsub.f32 1.5, %v1008_v4 }
 0x514   : > { %v1010_v6 = vmul.f32 %v1384_v1, %v1009_v5 }
 0x516   : > { %v1014_v8 = vsel %vm1013_vm6, %v1384_v1, %v1010_v6 }
 0x517   : > { %v1015_v9 = vmul.f32 %v1014_v8, %v998_v56  ;;  %v1364_v56 = vld [vmem:[%s1936_s13] ss:$0 sm:$0xff] }
 0x519   : > { %v1019_v12 = vmul.f32 %v1359_v7, %v1015_v9 }
 0x51b   : > { %v1023_v13 = vadd.f32 %v1360_v10, %v1019_v12 }
 0x51d   : > { %1262 = vmatmul.msk.f32.vlgmr.msra.gmra.mxu0 %vm532_vm1, %v1023_v13 }
 0x59a   : > { %v1052_v23 = vpop.f32.mrf.mxu0 }
 0x59b   : > { %v1053_v24 = vadd.f32 %v1361_v22, %v1052_v23 }
 0x59d   : > { %v1056_v25 = vmul.f32 0.044715, %v1053_v24  ;;  %v1055_v31 = vmul.f32 0.5, %v1053_v24 }
 0x59f   : > { %v1057_v26 = vmul.f32 %v1056_v25, %v1053_v24 }
 0x5a1   : > { %v1058_v27 = vmul.f32 %v1057_v26, %v1053_v24 }
 0x5a3   : > { %v1059_v28 = vadd.f32 %v1058_v27, %v1053_v24 }
 0x5a5   : > { %v1060_v29 = vmul.f32 0.7978846, %v1059_v28 }
 0x5a7   : > { %1385 = vtanh.f32 %v1060_v29 }
 0x5ad   : > { %v1386_v30 = vpop.eup %1385 }
 0x5ae   : > { %v1062_v32 = vadd.f32 1.0, %v1386_v30 }
 0x5b0   : > { %v1063_v33 = vmul.f32 %v1062_v32, %v1055_v31 }
 0x5b2   : > { %1263 = vmatmul.msk.f32.vlgmr.msrb.gmra.mxu1 %vm1076_vm7, %v1063_v33 }
 0x62f   : > { %v1097_v35 = vpop.f32.mrf.mxu1 }
 0x630   : > { %v1098_v36 = vadd.f32 %v1362_v34, %v1097_v35 }
 0x632   : > { %v1100_v37 = vadd.f32 %v1098_v36, %v1023_v13 }
 0x634   : > { %v1103_v38 = vsel %vm532_vm1, %v1100_v37, 0.0 }
 0x635   : > { %1104 = vadd.xlane.f32.xlu0 %v1103_v38 }
 0x6a8   : > { %v1105_v39 = vpop.xlane.xlu0 %1104 }
 0x6a9   : > { %v1106_v40 = vmul.f32 %v1105_v39, %v1780_v53 }
 0x6ab   : > { %v1107_v41 = vsub.f32 %v1100_v37, %v1106_v40 }
 0x6ad   : > { %v1108_v42 = vmul.f32 %v1107_v41, %v1107_v41 }
 0x6af   : > { %v1109_v43 = vsel %vm532_vm1, %v1108_v42, 0.0 }
 0x6b0   : > { %1110 = vadd.xlane.f32.xlu1 %v1109_v43 }
 0x723   : > { %v1111_v44 = vpop.xlane.xlu1 %1110 }
 0x724   : > { %v1112_v45 = vmul.f32 %v1111_v44, %v1780_v53  ;;  %v1363_v53 = vld [vmem:[%s1907_s12] ss:$0 sm:$0xff] }
 0x726   : > { %v1113_v46 = vadd.f32 1e-12, %v1112_v45 }
 0x728   : > { %1387 = vrsqrt.f32 %v1113_v46  ;;  %vm1120_vm9 = vweird.f32 %v1113_v46 }
 0x72e   : > { %v1388_v47 = vpop.eup %1387 }
 0x72f   : > { %v1115_v48 = vmul.f32 %v1388_v47, %v1113_v46  ;;  %vm1121_vm8 = vweird.f32 %v1388_v47 }
 0x730   : > { %vm1122_vm10 = vmor %vm1120_vm9, %vm1121_vm8 }
 0x731   : > { %v1116_v49 = vmul.f32 %v1388_v47, %v1115_v48 }
 0x733   : > { %v1117_v50 = vmul.f32 0.5, %v1116_v49 }
 0x735   : > { %v1118_v51 = vsub.f32 1.5, %v1117_v50 }
 0x737   : > { %v1119_v52 = vmul.f32 %v1388_v47, %v1118_v51 }
 0x739   : > { %v1123_v54 = vsel %vm1122_vm10, %v1388_v47, %v1119_v52 }
 0x73a   : > { %v1124_v55 = vmul.f32 %v1123_v54, %v1107_v41 }
 0x73c   : > { %v1128_v57 = vmul.f32 %v1363_v53, %v1124_v55 }
 0x73e   : > { %v1132_v11 = vadd.f32 %v1364_v56, %v1128_v57 }
 0x740   : > { %1133 = vst.msk [vmem:[#allocation2] sm:$0xff] %vm532_vm1, %v1132_v11 }
 0x741   : > { %1134 = vst.msk [vmem:[%s483_s15] sm:$0xff] %vm532_vm1, %v1132_v11 }
 0x742   : > { %1416 = shalt.err (!%p1413_p7)
}
 0x743   : > { %1269 = dma.vmem_to_hbm [thread:$0]  (%p1614_p3), %s1151_s19, 128, %s1153_s24, %s1136_s25  }
 0x744 PF: > { %s1938_s15 = sld [smem:[#allocation10_spill]] }
 0x745   : > { %s1939_s18 = sld [smem:[#allocation6_spill]] }
 0x74a   : > { %p1275_p9 = scmp.ge.s32.totalorder %s1938_s15, 2 }
 0x74b   : > { %s1164_s13 = sand.u32 1, %s1939_s18  }
 0x74c   : > { %p1272_p10 = pnand %p1275_p9, %p1623_p8  ;;  %s1165_s23 = scalar_lea.sflag [#allocation4], %s1164_s13 }
 0x74e   : > { %p1273_p11 = pneg %p1272_p10 }
 0x750   : > { %1450 = dma.done.wait (%p1273_p11), %s1165_s23, 128  }
 0x751   : > { %1452 = vsyncadd (%p1273_p11), %s1165_s23, 4294967168  ;;  %s27_s20 = sadd.s32 1, %s1938_s15   ;;  %s1941_s22 = sld [smem:[#allocation7_spill]] }
 0x752   : > { %p24_p12 = scmp.ge.s32.totalorder %s27_s20, 6   ;;  %s1942_s15 = sld [smem:[#allocation15_spill]] }
 0x753   : > { %s1943_s16 = sld [smem:[#allocation8_spill]]  ;;  %s1947_s29 = smov %s1459_s30 }
 0x754   : > { %s1944_s17 = sld [smem:[#allocation9_spill]]  ;;  %26 = sbr.rel (!%p24_p12) target bundleno = 7 (0x7), region = 118 }
 0x755   : > { %s1945_s18 = sld [smem:[#allocation11_spill]] }
 0x756   : > { %s1946_s19 = sld [smem:[#allocation13_spill]] }
 0x757   : > { %s1948_s30 = smov %s1941_s22 }
 0x759   :  { %1171 = vsyncpa [#allocation4], 1 }
 0x75a   :  { %1173 = vsyncpa [#allocation4 + $0x1], 1 }

</bundles_post_ra>
